<compile_context>
chip_gen: v7x
topology: tpu7x:2x2x1
jax: 0.10.0
libtpu: 0.0.40
codegen_flags: <defaults>
</compile_context>

<pallas_src>
import functools

import jax
import jax.numpy as jnp
from jax.experimental import pallas as pl
from jax.experimental.pallas import tpu as pltpu

LOG_STD_MIN = -20.0
LOG_STD_MAX = 2.0
LEAKY_SLOPE = 0.01  # PyTorch F.leaky_relu default negative_slope


def _round_up(x, m):
    return (x + m - 1) // m * m


def _leaky_relu(x):
    return jnp.where(x >= 0, x, LEAKY_SLOPE * x)


def _make_kernel(num_actions):
    A = num_actions

    def kernel(state_ref, w1_ref, b1_ref, w2_ref, b2_ref, wh_ref, bh_ref, out_ref):
        # Layer 1: leaky_relu(state @ W1 + b1) -- bf16 MXU, f32 accum / VPU epilogue
        h = jnp.dot(state_ref[...], w1_ref[...], preferred_element_type=jnp.float32)
        h = _leaky_relu(h + b1_ref[...])
        # Layer 2: leaky_relu(h @ W2 + b2)
        h = jnp.dot(h.astype(jnp.bfloat16), w2_ref[...],
                    preferred_element_type=jnp.float32)
        h = _leaky_relu(h + b2_ref[...])
        # Fused heads: columns [0:A] = mean, [A:2A] = log_std, rest zero pad.
        head = jnp.dot(h.astype(jnp.bfloat16), wh_ref[...],
                       preferred_element_type=jnp.float32) + bh_ref[...]
        col = jax.lax.broadcasted_iota(jnp.int32, head.shape, dimension=1)
        is_log_std = (col >= A) & (col < 2 * A)
        out_ref[...] = jnp.where(
            is_log_std, jnp.clip(head, LOG_STD_MIN, LOG_STD_MAX), head
        ).astype(out_ref.dtype)

    return kernel


def prepare_params(params):
    """One-time padding + dtype casting of the weights (hoisted out of forward).

    params: dict with w1 [in,H], b1 [1,H], w2 [H,H], b2 [1,H],
            wm [H,A], bm [1,A], ws [H,A], bs [1,A]   (float32)
    Returns padded bf16 weights / f32 biases ready for the kernel.
    """
    num_inputs, H = params["w1"].shape
    A = params["wm"].shape[1]
    H_pad = _round_up(max(H, 128), 128)            # MXU / lane aligned hidden dim
    NP = _round_up(max(2 * A, 128), 128)           # lane-dense fused head width
    f32, bf16 = jnp.float32, jnp.bfloat16

    # Zero padding preserves exact semantics: leaky_relu(0)=0 and zero
    # rows/cols contribute nothing downstream.
    w1 = jnp.zeros((num_inputs, H_pad), bf16).at[:, :H].set(params["w1"].astype(bf16))
    b1 = jnp.zeros((1, H_pad), f32).at[:, :H].set(params["b1"].reshape(1, -1).astype(f32))
    w2 = jnp.zeros((H_pad, H_pad), bf16).at[:H, :H].set(params["w2"].astype(bf16))
    b2 = jnp.zeros((1, H_pad), f32).at[:, :H].set(params["b2"].reshape(1, -1).astype(f32))
    wh = jnp.zeros((H_pad, NP), bf16)
    wh = wh.at[:H, :A].set(params["wm"].astype(bf16))
    wh = wh.at[:H, A:2 * A].set(params["ws"].astype(bf16))
    bh = jnp.zeros((1, NP), f32)
    bh = bh.at[:, :A].set(params["bm"].reshape(1, -1).astype(f32))
    bh = bh.at[:, A:2 * A].set(params["bs"].reshape(1, -1).astype(f32))
    return dict(w1=w1, b1=b1, w2=w2, b2=b2, wh=wh, bh=bh)


@functools.partial(jax.jit,
                   static_argnames=("num_actions", "block_b", "weight_buffers"))
def _forward(state, prepared, *, num_actions, block_b, weight_buffers):
    B, num_inputs = state.shape
    H_pad = prepared["w2"].shape[0]
    NP = prepared["wh"].shape[1]
    A = num_actions
    assert prepared["w1"].shape == (num_inputs, H_pad)
    assert 2 * A <= NP

    # Batch tile: multiple of 16 (bf16 packs 16 rows/vreg), large enough to
    # amortize the ~0.35us per-grid-step overhead, >= 2 tiles when possible
    # (v7x megacore sharding), and without near-doubling B via padding.
    n_target = max(pl.cdiv(B, block_b), 2 if B >= 32 else 1)
    TB = min(_round_up(pl.cdiv(B, n_target), 16), _round_up(B, 16))
    B_pad = _round_up(B, TB)
    num_tiles = B_pad // TB

    # Stream state as bf16; skip the padding copy when none is needed.
    if B == B_pad:
        state_p = state.astype(jnp.bfloat16)
    else:
        state_p = jnp.zeros((B_pad, num_inputs), jnp.bfloat16).at[:B, :].set(
            state.astype(jnp.bfloat16))

    def resident(shape):
        # Grid-invariant operands: DMA'd once, stay resident in VMEM.
        if weight_buffers == 1:
            return pl.BlockSpec(shape, lambda i: (0, 0),
                                pipeline_mode=pl.Buffered(1))
        return pl.BlockSpec(shape, lambda i: (0, 0))

    in_specs = [
        pl.BlockSpec((TB, num_inputs), lambda i: (i, 0)),   # streamed state tiles
        resident((num_inputs, H_pad)), resident((1, H_pad)),
        resident((H_pad, H_pad)),      resident((1, H_pad)),
        resident((H_pad, NP)),         resident((1, NP)),
    ]
    out_spec = pl.BlockSpec((TB, NP), lambda i: (i, 0))

    # Exact VMEM accounting: resident weights (x buffer count) +
    # double-buffered state/out tiles + headroom for in-kernel intermediates.
    weight_bytes = (num_inputs * H_pad + H_pad * H_pad + H_pad * NP) * 2  # bf16
    bias_bytes = (2 * H_pad + NP) * 4                                     # f32
    resident_bytes = (weight_bytes + bias_bytes) * weight_buffers
    tile_bytes = 2 * (TB * num_inputs * 2 + TB * NP * 4)                  # 2x buffered
    vmem_need = resident_bytes + tile_bytes + (4 << 20)                   # headroom
    if vmem_need > (56 << 20):
        # TODO(synk): K-tile w2 across a second grid axis for hidden sizes too
        # large to keep fully resident in v7x's 64 MiB VMEM.
        raise ValueError(
            f"Resident weights need {vmem_need >> 20} MiB VMEM; exceeds the "
            "~56 MiB budget safe for v7x. Reduce hidden_size or add K-tiling.")
    vmem_limit = int(min(max(vmem_need, 16 << 20), 56 << 20))

    flops = 2 * B_pad * (num_inputs * H_pad + H_pad * H_pad + H_pad * NP)
    bytes_accessed = (B_pad * num_inputs * 2            # bf16 state stream
                      + weight_bytes + bias_bytes       # weights read once
                      + B_pad * NP * 4)                 # f32 output writeback

    out = pl.pallas_call(
        _make_kernel(A),
        out_shape=jax.ShapeDtypeStruct((B_pad, NP), jnp.float32),
        grid=(num_tiles,),
        in_specs=in_specs,
        out_specs=out_spec,
        compiler_params=pltpu.CompilerParams(
            dimension_semantics=("parallel",),
            vmem_limit_bytes=vmem_limit,
        ),
        cost_estimate=pl.CostEstimate(
            flops=flops, transcendentals=0, bytes_accessed=bytes_accessed),
    )(state_p, prepared["w1"], prepared["b1"], prepared["w2"], prepared["b2"],
      prepared["wh"], prepared["bh"])

    mean = out[:B, :A]
    log_std = out[:B, A:2 * A]
    return mean, log_std


def gaussian_policy_forward(state, prepared, num_actions, *, block_b=512):
    """Pallas implementation of GaussianPolicy.forward.

    state: [B, num_inputs] float32 (or bf16)
    prepared: output of prepare_params(params)
    returns: (mean [B, num_actions], log_std [B, num_actions]) float32
    """
    try:
        # Preferred: single-buffered resident weights (halves their VMEM use).
        return _forward(state, prepared, num_actions=num_actions,
                        block_b=block_b, weight_buffers=1)
    except Exception:
        # Fallback for JAX versions without per-operand pipeline_mode support:
        # default double-buffering; numerically identical, just more VMEM.
        return _forward(state, prepared, num_actions=num_actions,
                        block_b=block_b, weight_buffers=2)


def init_params(key, num_inputs, num_actions, hidden_size):
    """Deterministic synthetic init (uniform, like a generic weights_init)."""
    ks = jax.random.split(key, 8)

    def lin(kw, kb, fan_in, fan_out):
        bound = 1.0 / jnp.sqrt(jnp.float32(fan_in))
        w = jax.random.uniform(kw, (fan_in, fan_out), jnp.float32, -bound, bound)
        b = jax.random.uniform(kb, (1, fan_out), jnp.float32, -bound, bound)
        return w, b

    w1, b1 = lin(ks[0], ks[1], num_inputs, hidden_size)
    w2, b2 = lin(ks[2], ks[3], hidden_size, hidden_size)
    wm, bm = lin(ks[4], ks[5], hidden_size, num_actions)
    ws, bs = lin(ks[6], ks[7], hidden_size, num_actions)
    return dict(w1=w1, b1=b1, w2=w2, b2=b2, wm=wm, bm=bm, ws=ws, bs=bs)


def _reference_forward(state, p):
    x = _leaky_relu(state @ p["w1"] + p["b1"])
    x = _leaky_relu(x @ p["w2"] + p["b2"])
    mean = x @ p["wm"] + p["bm"]
    log_std = jnp.clip(x @ p["ws"] + p["bs"], LOG_STD_MIN, LOG_STD_MAX)
    return mean, log_std


if __name__ == "__main__":
    key = jax.random.PRNGKey(0)
    k_state, k_params = jax.random.split(key)

    batch = 8
    num_inputs = 16
    num_actions = 4
    hidden_size = 32

    state = jax.random.normal(k_state, (batch, num_inputs), jnp.float32)
    params = init_params(k_params, num_inputs, num_actions, hidden_size)
    prepared = prepare_params(params)     # one-time pad + bf16 cast

    mean, log_std = gaussian_policy_forward(state, prepared, num_actions)
    jax.block_until_ready((mean, log_std))

    assert mean.shape == (batch, num_actions)
    assert log_std.shape == (batch, num_actions)

    # Correctness vs. pure-f32 JAX reference (bf16 MXU matmuls loosen tolerance).
    ref_mean, ref_log_std = _reference_forward(state, params)
    assert jnp.allclose(mean, ref_mean, rtol=5e-2, atol=5e-2), "mean mismatch"
    assert jnp.allclose(log_std, ref_log_std, rtol=5e-2, atol=5e-2), "log_std mismatch"

    print("KERNEL_OK")
</pallas_src>

<mosaic_0001>
module attributes {stable_mosaic.version = 11 : i64} {
  func.func @kernel(%arg0: i32, %arg1: memref<16x16xbf16, #tpu.memory_space<vmem>>, %arg2: memref<16x128xbf16, #tpu.memory_space<vmem>>, %arg3: memref<1x128xf32, #tpu.memory_space<vmem>>, %arg4: memref<128x128xbf16, #tpu.memory_space<vmem>>, %arg5: memref<1x128xf32, #tpu.memory_space<vmem>>, %arg6: memref<128x128xbf16, #tpu.memory_space<vmem>>, %arg7: memref<1x128xf32, #tpu.memory_space<vmem>>, %arg8: memref<16x128xf32, #tpu.memory_space<vmem>>) attributes {dimension_semantics = [#tpu.dimension_semantics<parallel>], iteration_bounds = array<i64: 1>, scalar_prefetch = 0 : i64, scratch_operands = 0 : i64, tpu.core_type = #tpu.core_type<tc>, window_params = [{transform_indices = @transform_0, window_bounds = array<i64: 16, 16>}, {pipeline_mode = #tpu.pipeline_mode<synchronous>, transform_indices = @transform_1, window_bounds = array<i64: 16, 128>}, {pipeline_mode = #tpu.pipeline_mode<synchronous>, transform_indices = @transform_2, window_bounds = array<i64: 1, 128>}, {pipeline_mode = #tpu.pipeline_mode<synchronous>, transform_indices = @transform_3, window_bounds = array<i64: 128, 128>}, {pipeline_mode = #tpu.pipeline_mode<synchronous>, transform_indices = @transform_4, window_bounds = array<i64: 1, 128>}, {pipeline_mode = #tpu.pipeline_mode<synchronous>, transform_indices = @transform_5, window_bounds = array<i64: 128, 128>}, {pipeline_mode = #tpu.pipeline_mode<synchronous>, transform_indices = @transform_6, window_bounds = array<i64: 1, 128>}, {transform_indices = @transform_7, window_bounds = array<i64: 16, 128>}]} {
    %c0 = arith.constant 0 : index
    %c0_0 = arith.constant 0 : index
    %0 = vector.load %arg1[%c0, %c0_0] : memref<16x16xbf16, #tpu.memory_space<vmem>>, vector<16x16xbf16>
    %c0_1 = arith.constant 0 : index
    %c0_2 = arith.constant 0 : index
    %1 = vector.load %arg2[%c0_1, %c0_2] : memref<16x128xbf16, #tpu.memory_space<vmem>>, vector<16x128xbf16>
    %cst = arith.constant dense<0.000000e+00> : vector<16x128xf32>
    %2 = tpu.matmul %0, %1, %cst {dimension_numbers = #tpu.dot_dimension_numbers<[1], [0], [0], [1], [0, 0, 1, 1], [], []>} : vector<16x16xbf16>, vector<16x128xbf16>, vector<16x128xf32> -> vector<16x128xf32>
    %c0_3 = arith.constant 0 : index
    %c0_4 = arith.constant 0 : index
    %3 = vector.load %arg3[%c0_3, %c0_4] : memref<1x128xf32, #tpu.memory_space<vmem>>, vector<1x128xf32>
    %4 = vector.broadcast %3 : vector<1x128xf32> to vector<16x128xf32>
    %5 = arith.addf %2, %4 : vector<16x128xf32>
    %cst_5 = arith.constant 0.000000e+00 : f32
    %6 = vector.broadcast %cst_5 : f32 to vector<16x128xf32>
    %7 = arith.cmpf oge, %5, %6 : vector<16x128xf32>
    %cst_6 = arith.constant 0.00999999977 : f32
    %8 = vector.broadcast %cst_6 : f32 to vector<16x128xf32>
    %9 = arith.mulf %8, %5 : vector<16x128xf32>
    %10 = arith.select %7, %5, %9 : vector<16x128xi1>, vector<16x128xf32>
    %11 = arith.truncf %10 : vector<16x128xf32> to vector<16x128xbf16>
    %c0_7 = arith.constant 0 : index
    %c0_8 = arith.constant 0 : index
    %12 = vector.load %arg4[%c0_7, %c0_8] : memref<128x128xbf16, #tpu.memory_space<vmem>>, vector<128x128xbf16>
    %cst_9 = arith.constant dense<0.000000e+00> : vector<16x128xf32>
    %13 = tpu.matmul %11, %12, %cst_9 {dimension_numbers = #tpu.dot_dimension_numbers<[1], [0], [0], [1], [0, 0, 1, 1], [], []>} : vector<16x128xbf16>, vector<128x128xbf16>, vector<16x128xf32> -> vector<16x128xf32>
    %c0_10 = arith.constant 0 : index
    %c0_11 = arith.constant 0 : index
    %14 = vector.load %arg5[%c0_10, %c0_11] : memref<1x128xf32, #tpu.memory_space<vmem>>, vector<1x128xf32>
    %15 = vector.broadcast %14 : vector<1x128xf32> to vector<16x128xf32>
    %16 = arith.addf %13, %15 : vector<16x128xf32>
    %cst_12 = arith.constant 0.000000e+00 : f32
    %17 = vector.broadcast %cst_12 : f32 to vector<16x128xf32>
    %18 = arith.cmpf oge, %16, %17 : vector<16x128xf32>
    %cst_13 = arith.constant 0.00999999977 : f32
    %19 = vector.broadcast %cst_13 : f32 to vector<16x128xf32>
    %20 = arith.mulf %19, %16 : vector<16x128xf32>
    %21 = arith.select %18, %16, %20 : vector<16x128xi1>, vector<16x128xf32>
    %22 = arith.truncf %21 : vector<16x128xf32> to vector<16x128xbf16>
    %c0_14 = arith.constant 0 : index
    %c0_15 = arith.constant 0 : index
    %23 = vector.load %arg6[%c0_14, %c0_15] : memref<128x128xbf16, #tpu.memory_space<vmem>>, vector<128x128xbf16>
    %cst_16 = arith.constant dense<0.000000e+00> : vector<16x128xf32>
    %24 = tpu.matmul %22, %23, %cst_16 {dimension_numbers = #tpu.dot_dimension_numbers<[1], [0], [0], [1], [0, 0, 1, 1], [], []>} : vector<16x128xbf16>, vector<128x128xbf16>, vector<16x128xf32> -> vector<16x128xf32>
    %c0_17 = arith.constant 0 : index
    %c0_18 = arith.constant 0 : index
    %25 = vector.load %arg7[%c0_17, %c0_18] : memref<1x128xf32, #tpu.memory_space<vmem>>, vector<1x128xf32>
    %26 = vector.broadcast %25 : vector<1x128xf32> to vector<16x128xf32>
    %27 = arith.addf %24, %26 : vector<16x128xf32>
    %28 = tpu.iota {dimensions = array<i32: 1>} : vector<16x128xi32>
    %c4_i32 = arith.constant 4 : i32
    %29 = vector.broadcast %c4_i32 : i32 to vector<16x128xi32>
    %30 = arith.cmpi sge, %28, %29 : vector<16x128xi32>
    %c8_i32 = arith.constant 8 : i32
    %31 = vector.broadcast %c8_i32 : i32 to vector<16x128xi32>
    %32 = arith.cmpi slt, %28, %31 : vector<16x128xi32>
    %33 = arith.andi %30, %32 : vector<16x128xi1>
    %cst_19 = arith.constant -2.000000e+01 : f32
    %cst_20 = arith.constant 2.000000e+00 : f32
    %34 = vector.broadcast %cst_19 : f32 to vector<16x128xf32>
    %35 = arith.maximumf %34, %27 : vector<16x128xf32>
    %36 = vector.broadcast %cst_20 : f32 to vector<16x128xf32>
    %37 = arith.minimumf %36, %35 : vector<16x128xf32>
    %38 = arith.select %33, %37, %27 : vector<16x128xi1>, vector<16x128xf32>
    %c0_21 = arith.constant 0 : index
    %c0_22 = arith.constant 0 : index
    %39 = vector.load %arg8[%c0_21, %c0_22] : memref<16x128xf32, #tpu.memory_space<vmem>>, vector<16x128xf32>
    tpu.vector_store %arg8[%c0_21, %c0_22], %38 {strides = array<i32>} : memref<16x128xf32, #tpu.memory_space<vmem>>, vector<16x128xf32>,
    return
  }
  func.func @transform_0(%arg0: i32) -> (i32, i32) {
    %c0_i32 = arith.constant 0 : i32
    %c0_i32_0 = arith.constant 0 : i32
    return %arg0, %c0_i32 : i32, i32
  }
  func.func @transform_1(%arg0: i32) -> (i32, i32) {
    %c0_i32 = arith.constant 0 : i32
    %c0_i32_0 = arith.constant 0 : i32
    %c0_i32_1 = arith.constant 0 : i32
    return %c0_i32, %c0_i32_0 : i32, i32
  }
  func.func @transform_2(%arg0: i32) -> (i32, i32) {
    %c0_i32 = arith.constant 0 : i32
    %c0_i32_0 = arith.constant 0 : i32
    %c0_i32_1 = arith.constant 0 : i32
    return %c0_i32, %c0_i32_0 : i32, i32
  }
  func.func @transform_3(%arg0: i32) -> (i32, i32) {
    %c0_i32 = arith.constant 0 : i32
    %c0_i32_0 = arith.constant 0 : i32
    %c0_i32_1 = arith.constant 0 : i32
    return %c0_i32, %c0_i32_0 : i32, i32
  }
  func.func @transform_4(%arg0: i32) -> (i32, i32) {
    %c0_i32 = arith.constant 0 : i32
    %c0_i32_0 = arith.constant 0 : i32
    %c0_i32_1 = arith.constant 0 : i32
    return %c0_i32, %c0_i32_0 : i32, i32
  }
  func.func @transform_5(%arg0: i32) -> (i32, i32) {
    %c0_i32 = arith.constant 0 : i32
    %c0_i32_0 = arith.constant 0 : i32
    %c0_i32_1 = arith.constant 0 : i32
    return %c0_i32, %c0_i32_0 : i32, i32
  }
  func.func @transform_6(%arg0: i32) -> (i32, i32) {
    %c0_i32 = arith.constant 0 : i32
    %c0_i32_0 = arith.constant 0 : i32
    %c0_i32_1 = arith.constant 0 : i32
    return %c0_i32, %c0_i32_0 : i32, i32
  }
  func.func @transform_7(%arg0: i32) -> (i32, i32) {
    %c0_i32 = arith.constant 0 : i32
    %c0_i32_0 = arith.constant 0 : i32
    return %arg0, %c0_i32 : i32, i32
  }
}

module attributes {stable_mosaic.version = 11 : i64} {
  func.func @kernel(%arg0: i32, %arg1: memref<16x16xbf16, #tpu.memory_space<vmem>>, %arg2: memref<16x128xbf16, #tpu.memory_space<vmem>>, %arg3: memref<1x128xf32, #tpu.memory_space<vmem>>, %arg4: memref<128x128xbf16, #tpu.memory_space<vmem>>, %arg5: memref<1x128xf32, #tpu.memory_space<vmem>>, %arg6: memref<128x128xbf16, #tpu.memory_space<vmem>>, %arg7: memref<1x128xf32, #tpu.memory_space<vmem>>, %arg8: memref<16x128xf32, #tpu.memory_space<vmem>>) attributes {dimension_semantics = [#tpu.dimension_semantics<parallel>], iteration_bounds = array<i64: 1>, scalar_prefetch = 0 : i64, scratch_operands = 0 : i64, tpu.core_type = #tpu.core_type<tc>, window_params = [{transform_indices = @transform_0, window_bounds = array<i64: 16, 16>}, {pipeline_mode = #tpu.pipeline_mode<synchronous>, transform_indices = @transform_1, window_bounds = array<i64: 16, 128>}, {pipeline_mode = #tpu.pipeline_mode<synchronous>, transform_indices = @transform_2, window_bounds = array<i64: 1, 128>}, {pipeline_mode = #tpu.pipeline_mode<synchronous>, transform_indices = @transform_3, window_bounds = array<i64: 128, 128>}, {pipeline_mode = #tpu.pipeline_mode<synchronous>, transform_indices = @transform_4, window_bounds = array<i64: 1, 128>}, {pipeline_mode = #tpu.pipeline_mode<synchronous>, transform_indices = @transform_5, window_bounds = array<i64: 128, 128>}, {pipeline_mode = #tpu.pipeline_mode<synchronous>, transform_indices = @transform_6, window_bounds = array<i64: 1, 128>}, {transform_indices = @transform_7, window_bounds = array<i64: 16, 128>}]} {
    %c0 = arith.constant 0 : index
    %c0_0 = arith.constant 0 : index
    %0 = vector.load %arg1[%c0, %c0_0] : memref<16x16xbf16, #tpu.memory_space<vmem>>, vector<16x16xbf16>
    %c0_1 = arith.constant 0 : index
    %c0_2 = arith.constant 0 : index
    %1 = vector.load %arg2[%c0_1, %c0_2] : memref<16x128xbf16, #tpu.memory_space<vmem>>, vector<16x128xbf16>
    %cst = arith.constant dense<0.000000e+00> : vector<16x128xf32>
    %2 = tpu.matmul %0, %1, %cst {dimension_numbers = #tpu.dot_dimension_numbers<[1], [0], [0], [1], [0, 0, 1, 1], [], []>} : vector<16x16xbf16>, vector<16x128xbf16>, vector<16x128xf32> -> vector<16x128xf32>
    %c0_3 = arith.constant 0 : index
    %c0_4 = arith.constant 0 : index
    %3 = vector.load %arg3[%c0_3, %c0_4] : memref<1x128xf32, #tpu.memory_space<vmem>>, vector<1x128xf32>
    %4 = vector.broadcast %3 : vector<1x128xf32> to vector<16x128xf32>
    %5 = arith.addf %2, %4 : vector<16x128xf32>
    %cst_5 = arith.constant 0.000000e+00 : f32
    %6 = vector.broadcast %cst_5 : f32 to vector<16x128xf32>
    %7 = arith.cmpf oge, %5, %6 : vector<16x128xf32>
    %cst_6 = arith.constant 0.00999999977 : f32
    %8 = vector.broadcast %cst_6 : f32 to vector<16x128xf32>
    %9 = arith.mulf %8, %5 : vector<16x128xf32>
    %10 = arith.select %7, %5, %9 : vector<16x128xi1>, vector<16x128xf32>
    %11 = arith.truncf %10 : vector<16x128xf32> to vector<16x128xbf16>
    %c0_7 = arith.constant 0 : index
    %c0_8 = arith.constant 0 : index
    %12 = vector.load %arg4[%c0_7, %c0_8] : memref<128x128xbf16, #tpu.memory_space<vmem>>, vector<128x128xbf16>
    %cst_9 = arith.constant dense<0.000000e+00> : vector<16x128xf32>
    %13 = tpu.matmul %11, %12, %cst_9 {dimension_numbers = #tpu.dot_dimension_numbers<[1], [0], [0], [1], [0, 0, 1, 1], [], []>} : vector<16x128xbf16>, vector<128x128xbf16>, vector<16x128xf32> -> vector<16x128xf32>
    %c0_10 = arith.constant 0 : index
    %c0_11 = arith.constant 0 : index
    %14 = vector.load %arg5[%c0_10, %c0_11] : memref<1x128xf32, #tpu.memory_space<vmem>>, vector<1x128xf32>
    %15 = vector.broadcast %14 : vector<1x128xf32> to vector<16x128xf32>
    %16 = arith.addf %13, %15 : vector<16x128xf32>
    %cst_12 = arith.constant 0.000000e+00 : f32
    %17 = vector.broadcast %cst_12 : f32 to vector<16x128xf32>
    %18 = arith.cmpf oge, %16, %17 : vector<16x128xf32>
    %cst_13 = arith.constant 0.00999999977 : f32
    %19 = vector.broadcast %cst_13 : f32 to vector<16x128xf32>
    %20 = arith.mulf %19, %16 : vector<16x128xf32>
    %21 = arith.select %18, %16, %20 : vector<16x128xi1>, vector<16x128xf32>
    %22 = arith.truncf %21 : vector<16x128xf32> to vector<16x128xbf16>
    %c0_14 = arith.constant 0 : index
    %c0_15 = arith.constant 0 : index
    %23 = vector.load %arg6[%c0_14, %c0_15] : memref<128x128xbf16, #tpu.memory_space<vmem>>, vector<128x128xbf16>
    %cst_16 = arith.constant dense<0.000000e+00> : vector<16x128xf32>
    %24 = tpu.matmul %22, %23, %cst_16 {dimension_numbers = #tpu.dot_dimension_numbers<[1], [0], [0], [1], [0, 0, 1, 1], [], []>} : vector<16x128xbf16>, vector<128x128xbf16>, vector<16x128xf32> -> vector<16x128xf32>
    %c0_17 = arith.constant 0 : index
    %c0_18 = arith.constant 0 : index
    %25 = vector.load %arg7[%c0_17, %c0_18] : memref<1x128xf32, #tpu.memory_space<vmem>>, vector<1x128xf32>
    %26 = vector.broadcast %25 : vector<1x128xf32> to vector<16x128xf32>
    %27 = arith.addf %24, %26 : vector<16x128xf32>
    %28 = tpu.iota {dimensions = array<i32: 1>} : vector<16x128xi32>
    %c4_i32 = arith.constant 4 : i32
    %29 = vector.broadcast %c4_i32 : i32 to vector<16x128xi32>
    %30 = arith.cmpi sge, %28, %29 : vector<16x128xi32>
    %c8_i32 = arith.constant 8 : i32
    %31 = vector.broadcast %c8_i32 : i32 to vector<16x128xi32>
    %32 = arith.cmpi slt, %28, %31 : vector<16x128xi32>
    %33 = arith.andi %30, %32 : vector<16x128xi1>
    %cst_19 = arith.constant -2.000000e+01 : f32
    %cst_20 = arith.constant 2.000000e+00 : f32
    %34 = vector.broadcast %cst_19 : f32 to vector<16x128xf32>
    %35 = arith.maximumf %34, %27 : vector<16x128xf32>
    %36 = vector.broadcast %cst_20 : f32 to vector<16x128xf32>
    %37 = arith.minimumf %36, %35 : vector<16x128xf32>
    %38 = arith.select %33, %37, %27 : vector<16x128xi1>, vector<16x128xf32>
    %c0_21 = arith.constant 0 : index
    %c0_22 = arith.constant 0 : index
    %39 = vector.load %arg8[%c0_21, %c0_22] : memref<16x128xf32, #tpu.memory_space<vmem>>, vector<16x128xf32>
    tpu.vector_store %arg8[%c0_21, %c0_22], %38 {strides = array<i32>} : memref<16x128xf32, #tpu.memory_space<vmem>>, vector<16x128xf32>,
    return
  }
  func.func @transform_0(%arg0: i32) -> (i32, i32) {
    %c0_i32 = arith.constant 0 : i32
    %c0_i32_0 = arith.constant 0 : i32
    return %arg0, %c0_i32 : i32, i32
  }
  func.func @transform_1(%arg0: i32) -> (i32, i32) {
    %c0_i32 = arith.constant 0 : i32
    %c0_i32_0 = arith.constant 0 : i32
    %c0_i32_1 = arith.constant 0 : i32
    return %c0_i32, %c0_i32_0 : i32, i32
  }
  func.func @transform_2(%arg0: i32) -> (i32, i32) {
    %c0_i32 = arith.constant 0 : i32
    %c0_i32_0 = arith.constant 0 : i32
    %c0_i32_1 = arith.constant 0 : i32
    return %c0_i32, %c0_i32_0 : i32, i32
  }
  func.func @transform_3(%arg0: i32) -> (i32, i32) {
    %c0_i32 = arith.constant 0 : i32
    %c0_i32_0 = arith.constant 0 : i32
    %c0_i32_1 = arith.constant 0 : i32
    return %c0_i32, %c0_i32_0 : i32, i32
  }
  func.func @transform_4(%arg0: i32) -> (i32, i32) {
    %c0_i32 = arith.constant 0 : i32
    %c0_i32_0 = arith.constant 0 : i32
    %c0_i32_1 = arith.constant 0 : i32
    return %c0_i32, %c0_i32_0 : i32, i32
  }
  func.func @transform_5(%arg0: i32) -> (i32, i32) {
    %c0_i32 = arith.constant 0 : i32
    %c0_i32_0 = arith.constant 0 : i32
    %c0_i32_1 = arith.constant 0 : i32
    return %c0_i32, %c0_i32_0 : i32, i32
  }
  func.func @transform_6(%arg0: i32) -> (i32, i32) {
    %c0_i32 = arith.constant 0 : i32
    %c0_i32_0 = arith.constant 0 : i32
    %c0_i32_1 = arith.constant 0 : i32
    return %c0_i32, %c0_i32_0 : i32, i32
  }
  func.func @transform_7(%arg0: i32) -> (i32, i32) {
    %c0_i32 = arith.constant 0 : i32
    %c0_i32_0 = arith.constant 0 : i32
    return %arg0, %c0_i32 : i32, i32
  }
}

</mosaic_0001>

<bundles_post_ra>
// kernel: _forward.1
= control target key start
LH: loop header
LB: loop body
LE: loop exit
PB: predicated region body
PF: predicated region fallthrough
CT: control target
= control target key end

     0   :  { %12 = vsyncpa [#allocation3], 0  ;;  %s650_s0 = inlined_call_operand.vmem [shape: bf16[16,16], index: 0, kind: input, shape index: {}]   ;;  %s651_s1 = inlined_call_operand.vmem [shape: bf16[16,128], index: 1, kind: input, shape index: {}]   ;;  %s652_s2 = inlined_call_operand.vmem [shape: f32[1,128], index: 2, kind: input, shape index: {}]   ;;  %s653_s3 = inlined_call_operand.hbm [shape: bf16[128,128], index: 3, kind: input, shape index: {}]   ;;  %s654_s4 = inlined_call_operand.vmem [shape: f32[1,128], index: 4, kind: input, shape index: {}]   ;;  %s655_s5 = inlined_call_operand.hbm [shape: bf16[128,128], index: 5, kind: input, shape index: {}]   ;;  %s656_s6 = inlined_call_operand.vmem [shape: f32[1,128], index: 6, kind: input, shape index: {}]   ;;  %s657_s7 = inlined_call_operand.vmem [shape: f32[16,128], index: 7, kind: output, shape index: {}]  }
   0x1   :  { %13 = vsyncpa [#allocation5], 0  ;;  %s539_s24 = smov [#allocation2]   ;;  %s491_s28 = scalar_lea.hbm %s653_s3, 1024 }
   0x2   :  { %s25_s25 = sshll.u32 %s539_s24, 4  ;;  %p492_p0 = scmp.ne.s32.totalorder %s653_s3, %s491_s28  ;;  %s26_s25 = int_to_ptr.vmem [resolvable:$true] %s25_s25 }
   0x3   :  { %p495_p1 = scmp.lt.u32.totalorder %s491_s28, %s653_s3 }
   0x5   :  { %p497_p2 = pnand %p495_p1, %p492_p0 }
   0x7   :  { %500 = shalt.err (!%p497_p2)
}
   0x8   :  { %s501_s10 = scalar_lea.vmem %s26_s25, 1024  ;;  %p506_p4 = scmp.lt.s32.totalorder %s26_s25, %s26_s25 }
   0x9   :  { %p502_p3 = scmp.ne.s32.totalorder %s26_s25, %s501_s10  ;;  %p507_p5 = scmp.lt.s32.totalorder %s501_s10, %s501_s10 }
   0xb   :  { %p508_p6 = por %p507_p5, %p506_p4 }
   0xd   :  { %p509_p7 = pnand %p508_p6, %p502_p3 }
   0xf   :  { %512 = shalt.err (!%p509_p7)
}
  0x10   :  { %s540_s11 = smov 64   ;;  %s541_s12 = smov 4  }
  0x11   :  { %31 = dma.hbm_to_vmem [thread:$0]  %s653_s3, 1024, %s26_s25, [#allocation3], %s540_s11, %s540_s11, %s541_s12  }
  0x12   :  { %s542_s15 = smov [#allocation4]   ;;  %s513_s19 = scalar_lea.hbm %s655_s5, 1024 }
  0x13   :  { %s39_s16 = sshll.u32 %s542_s15, 4  ;;  %p514_p8 = scmp.ne.s32.totalorder %s655_s5, %s513_s19  ;;  %s40_s16 = int_to_ptr.vmem [resolvable:$true] %s39_s16 }
  0x14   :  { %p517_p9 = scmp.lt.u32.totalorder %s513_s19, %s655_s5 }
  0x16   :  { %p519_p10 = pnand %p517_p9, %p514_p8 }
  0x18   :  { %522 = shalt.err (!%p519_p10)
}
  0x19   :  { %s523_s24 = scalar_lea.vmem %s40_s16, 1024  ;;  %p528_p12 = scmp.lt.s32.totalorder %s40_s16, %s40_s16 }
  0x1a   :  { %p524_p11 = scmp.ne.s32.totalorder %s40_s16, %s523_s24  ;;  %p529_p13 = scmp.lt.s32.totalorder %s523_s24, %s523_s24 }
  0x1c   :  { %p530_p0 = por %p529_p13, %p528_p12 }
  0x1e   :  { %p531_p1 = pnand %p530_p0, %p524_p11 }
  0x20   :  { %534 = shalt.err (!%p531_p1)
}
  0x21   :  { %45 = dma.hbm_to_vmem [thread:$0]  %s655_s5, 1024, %s40_s16, [#allocation5], %s540_s11, %s540_s11, %s541_s12  }
  0x22   :  { %535 = dma.done.wait [#allocation3], 1024  }
  0x23   :  { %536 = vsyncadd [#allocation3], 4294966272 }
  0x24   :  { %537 = dma.done.wait [#allocation5], 1024  }
  0x25   :  { %538 = vsyncadd [#allocation5], 4294966272  ;;  %v543_v0 = vmov 0.0   ;;  %vm544_vm0 = vmmov 0   ;;  %v473_v1 = vld [vmem:[%s651_s1] sm:$0xff]   ;;  %vm77_vm1 = vcmask 130048   ;;  %v360_v43 = vlaneseq }
  0x26   :  { %421 = vmatprep.subr.bf16.mxu0 %v543_v0  ;;  %423 = vmatprep.mubr.msk.bf16.mxu0 %vm544_vm0, %v543_v0  ;;  %v474_v2 = vld [vmem:[%s650_s0] sm:$0xff]   ;;  %v476_v4 = vld [vmem:[#allocation2 + $0x8] sm:$0xff]   ;;  %v477_v5 = vld [vmem:[#allocation2 + $0x10] sm:$0xff]  }
  0x27   :  { %427 = vmatprep.subr.bf16.mxu1 %v543_v0  ;;  %443 = vmatprep.mubr.msk.bf16.mxu1 %vm544_vm0, %v543_v0  ;;  %v475_v3 = vld [vmem:[#allocation2] sm:$0xff]   ;;  %v478_v6 = vld [vmem:[#allocation2 + $0x18] sm:$0xff]   ;;  %v480_v8 = vld [vmem:[#allocation2 + $0x28] sm:$0xff]   ;;  %v361_v44 = vand.u32 127, %v360_v43 }
  0x28   :  { %422 = vmatpush3.bf16.msra.mxu0 %v473_v1  ;;  %428 = vmatpush3.bf16.msra.mxu1 %v475_v3  ;;  %v479_v7 = vld [vmem:[#allocation2 + $0x20] sm:$0xff]   ;;  %v481_v9 = vld [vmem:[#allocation2 + $0x30] sm:$0xff]   ;;  %v482_v10 = vld [vmem:[#allocation2 + $0x38] sm:$0xff]  }
  0x29   :  { %447 = vmatprep.subr.bf16.mxu0 %v543_v0  ;;  %429 = vmatprep.subr.bf16.mxu1 %v543_v0  ;;  %v483_v11 = vld [vmem:[#allocation4] sm:$0xff]   ;;  %v484_v12 = vld [vmem:[#allocation4 + $0x8] sm:$0xff]   ;;  %v485_v13 = vld [vmem:[#allocation4 + $0x10] sm:$0xff]   ;;  %vm362_vm6 = vcmp.ge.s32.totalorder %v361_v44, 4  ;;  %vm363_vm7 = vcmp.lt.s32.totalorder %v361_v44, 8 }
  0x2a   :  { %v486_v14 = vld [vmem:[#allocation4 + $0x18] sm:$0xff]   ;;  %v487_v15 = vld [vmem:[#allocation4 + $0x20] sm:$0xff]   ;;  %v488_v16 = vld [vmem:[#allocation4 + $0x28] sm:$0xff]  }
  0x2b   :  { %424 = vmatmul.mubr.msk.bf16.vlgmr.msra.gmra.mrb[0].mxu0 %vm77_vm1, %v474_v2  ;;  %v379_v17 = vld [vmem:[%s652_s2] ss:$0 sm:$0xff]  ;;  %v489_v29 = vld [vmem:[#allocation4 + $0x30] sm:$0xff]   ;;  %v490_v30 = vld [vmem:[#allocation4 + $0x38] sm:$0xff]  }
  0x2c   :  { %463 = vmatprep.mubr.msk.bf16.mxu0 %vm544_vm0, %v543_v0  ;;  %430 = vmatpush3.bf16.msra.mxu1 %v476_v4  ;;  %v383_v31 = vld [vmem:[%s654_s4] ss:$0 sm:$0xff]  ;;  %vm364_vm8 = vmand %vm362_vm6, %vm363_vm7 }
  0x2d   :  { %431 = vmatprep.subr.bf16.mxu1 %v543_v0  ;;  %448 = vmatpush3.bf16.msra.mxu0 %v483_v11  ;;  %v392_v45 = vld [vmem:[%s656_s6] ss:$0 sm:$0xff] }
  0x2e   :  { %449 = vmatprep.subr.bf16.mxu0 %v543_v0 }
  0x30   :  { %432 = vmatpush3.bf16.msra.mxu1 %v477_v5 }
  0x31   :  { %433 = vmatprep.subr.bf16.mxu1 %v543_v0  ;;  %450 = vmatpush3.bf16.msra.mxu0 %v484_v12 }
  0x32   :  { %451 = vmatprep.subr.bf16.mxu0 %v543_v0 }
  0x34   :  { %434 = vmatpush3.bf16.msra.mxu1 %v478_v6 }
  0x35   :  { %435 = vmatprep.subr.bf16.mxu1 %v543_v0  ;;  %452 = vmatpush3.bf16.msra.mxu0 %v485_v13 }
  0x36   :  { %453 = vmatprep.subr.bf16.mxu0 %v543_v0 }
  0x38   :  { %436 = vmatpush3.bf16.msra.mxu1 %v479_v7 }
  0x39   :  { %437 = vmatprep.subr.bf16.mxu1 %v543_v0  ;;  %454 = vmatpush3.bf16.msra.mxu0 %v486_v14 }
  0x3a   :  { %455 = vmatprep.subr.bf16.mxu0 %v543_v0 }
  0x3c   :  { %438 = vmatpush3.bf16.msra.mxu1 %v480_v8 }
  0x3d   :  { %439 = vmatprep.subr.bf16.mxu1 %v543_v0  ;;  %456 = vmatpush3.bf16.msra.mxu0 %v487_v15 }
  0x3e   :  { %457 = vmatprep.subr.bf16.mxu0 %v543_v0 }
  0x40   :  { %440 = vmatpush3.bf16.msra.mxu1 %v481_v9 }
  0x41   :  { %441 = vmatprep.subr.bf16.mxu1 %v543_v0  ;;  %458 = vmatpush3.bf16.msra.mxu0 %v488_v16 }
  0x42   :  { %459 = vmatprep.subr.bf16.mxu0 %v543_v0 }
  0x44   :  { %442 = vmatpush3.bf16.msra.mxu1 %v482_v10 }
  0x45   :  { %460 = vmatpush3.bf16.msra.mxu0 %v489_v29 }
  0x46   :  { %461 = vmatprep.subr.bf16.mxu0 %v543_v0 }
  0x49   :  { %462 = vmatpush3.bf16.msra.mxu0 %v490_v30 }
  0xfe   :  { %v115_v18 = vpop.f32.mrb[0].mxu0 }
  0xff   :  { %v116_v19 = vadd.f32 %v379_v17, %v115_v18  ;;  %v425_v20 = vpop.f32.mrb[1].mxu0 }
 0x100   :  { %v118_v21 = vpop.f32.mrb[2].mxu0 }
 0x101   :  { %v124_v22 = vmul.f32 0.01, %v116_v19  ;;  %v119_v23 = vadd.f32 %v379_v17, %v118_v21  ;;  %v426_v24 = vpop.f32.mrb[3].mxu0  ;;  %vm122_vm2 = vcmp.ge.f32.partialorder %v116_v19, 0.0 }
 0x103   :  { %vm123_vm3 = vcmp.ge.f32.partialorder %v119_v23, 0.0  ;;  %v125_v25 = vmul.f32 0.01, %v119_v23  ;;  %v126_v26 = vsel %vm122_vm2, %v116_v19, %v124_v22 }
 0x105   :  { %v127_v27 = vsel %vm123_vm3, %v119_v23, %v125_v25 }
 0x106   :  { %v128_v28 = vpack.c.bf16 %v127_v27, %v126_v26 }
 0x108   :  { %444 = vmatmul.mubr.bf16.vlgmr.msra.gmra.mrb[0].mxu1 %v128_v28 }
 0x1db   :  { %v234_v32 = vpop.f32.mrb[0].mxu1 }
 0x1dc   :  { %v235_v33 = vadd.f32 %v383_v31, %v234_v32  ;;  %v445_v34 = vpop.f32.mrb[1].mxu1 }
 0x1dd   :  { %v237_v35 = vpop.f32.mrb[2].mxu1 }
 0x1de   :  { %v243_v36 = vmul.f32 0.01, %v235_v33  ;;  %v238_v37 = vadd.f32 %v383_v31, %v237_v35  ;;  %v446_v38 = vpop.f32.mrb[3].mxu1  ;;  %vm241_vm4 = vcmp.ge.f32.partialorder %v235_v33, 0.0 }
 0x1e0   :  { %vm242_vm5 = vcmp.ge.f32.partialorder %v238_v37, 0.0  ;;  %v244_v39 = vmul.f32 0.01, %v238_v37  ;;  %v245_v40 = vsel %vm241_vm4, %v235_v33, %v243_v36 }
 0x1e2   :  { %v246_v41 = vsel %vm242_vm5, %v238_v37, %v244_v39 }
 0x1e3   :  { %v247_v42 = vpack.c.bf16 %v246_v41, %v245_v40 }
 0x1e5   :  { %464 = vmatmul.mubr.bf16.vlgmr.msra.gmra.mrb[4].mxu0 %v247_v42 }
 0x2b8   :  { %v353_v46 = vpop.f32.mrb[4].mxu0 }
 0x2b9   :  { %v354_v47 = vadd.f32 %v392_v45, %v353_v46  ;;  %v465_v48 = vpop.f32.mrb[5].mxu0 }
 0x2ba   :  { %v356_v49 = vpop.f32.mrb[6].mxu0 }
 0x2bb   :  { %v365_v50 = vmax.f32 %v354_v47, -20.0  ;;  %v357_v51 = vadd.f32 %v392_v45, %v356_v49  ;;  %v466_v52 = vpop.f32.mrb[7].mxu0 }
 0x2bd   :  { %v367_v53 = vmin.f32 %v365_v50, 2.0  ;;  %v366_v54 = vmax.f32 %v357_v51, -20.0 }
 0x2bf   :  { %v369_v55 = vsel %vm364_vm8, %v367_v53, %v354_v47  ;;  %v368_v56 = vmin.f32 %v366_v54, 2.0 }
 0x2c0   :  { %371 = vst [vmem:[%s657_s7] sm:$0xff] %v369_v55 }
 0x2c1   :  { %v370_v57 = vsel %vm364_vm8, %v368_v56, %v357_v51 }
 0x2c2   :  { %372 = vst [vmem:[%s657_s7 + $0x8] sm:$0xff] %v370_v57 }
 0x2c3   :  { %377 = vsyncpa [#allocation3], 1 }
 0x2c4   :  { %378 = vsyncpa [#allocation5], 1 }

// kernel: _forward.1
= control target key start
LH: loop header
LB: loop body
LE: loop exit
PB: predicated region body
PF: predicated region fallthrough
CT: control target
= control target key end

     0   :  { %12 = vsyncpa [#allocation3], 0  ;;  %s650_s0 = inlined_call_operand.vmem [shape: bf16[16,16], index: 0, kind: input, shape index: {}]   ;;  %s651_s1 = inlined_call_operand.vmem [shape: bf16[16,128], index: 1, kind: input, shape index: {}]   ;;  %s652_s2 = inlined_call_operand.vmem [shape: f32[1,128], index: 2, kind: input, shape index: {}]   ;;  %s653_s3 = inlined_call_operand.hbm [shape: bf16[128,128], index: 3, kind: input, shape index: {}]   ;;  %s654_s4 = inlined_call_operand.vmem [shape: f32[1,128], index: 4, kind: input, shape index: {}]   ;;  %s655_s5 = inlined_call_operand.hbm [shape: bf16[128,128], index: 5, kind: input, shape index: {}]   ;;  %s656_s6 = inlined_call_operand.vmem [shape: f32[1,128], index: 6, kind: input, shape index: {}]   ;;  %s657_s7 = inlined_call_operand.vmem [shape: f32[16,128], index: 7, kind: output, shape index: {}]  }
   0x1   :  { %13 = vsyncpa [#allocation5], 0  ;;  %s539_s24 = smov [#allocation2]   ;;  %s491_s28 = scalar_lea.hbm %s653_s3, 1024 }
   0x2   :  { %s25_s25 = sshll.u32 %s539_s24, 4  ;;  %p492_p0 = scmp.ne.s32.totalorder %s653_s3, %s491_s28  ;;  %s26_s25 = int_to_ptr.vmem [resolvable:$true] %s25_s25 }
   0x3   :  { %p495_p1 = scmp.lt.u32.totalorder %s491_s28, %s653_s3 }
   0x5   :  { %p497_p2 = pnand %p495_p1, %p492_p0 }
   0x7   :  { %500 = shalt.err (!%p497_p2)
}
   0x8   :  { %s501_s10 = scalar_lea.vmem %s26_s25, 1024  ;;  %p506_p4 = scmp.lt.s32.totalorder %s26_s25, %s26_s25 }
   0x9   :  { %p502_p3 = scmp.ne.s32.totalorder %s26_s25, %s501_s10  ;;  %p507_p5 = scmp.lt.s32.totalorder %s501_s10, %s501_s10 }
   0xb   :  { %p508_p6 = por %p507_p5, %p506_p4 }
   0xd   :  { %p509_p7 = pnand %p508_p6, %p502_p3 }
   0xf   :  { %512 = shalt.err (!%p509_p7)
}
  0x10   :  { %s540_s11 = smov 64   ;;  %s541_s12 = smov 4  }
  0x11   :  { %31 = dma.hbm_to_vmem [thread:$0]  %s653_s3, 1024, %s26_s25, [#allocation3], %s540_s11, %s540_s11, %s541_s12  }
  0x12   :  { %s542_s15 = smov [#allocation4]   ;;  %s513_s19 = scalar_lea.hbm %s655_s5, 1024 }
  0x13   :  { %s39_s16 = sshll.u32 %s542_s15, 4  ;;  %p514_p8 = scmp.ne.s32.totalorder %s655_s5, %s513_s19  ;;  %s40_s16 = int_to_ptr.vmem [resolvable:$true] %s39_s16 }
  0x14   :  { %p517_p9 = scmp.lt.u32.totalorder %s513_s19, %s655_s5 }
  0x16   :  { %p519_p10 = pnand %p517_p9, %p514_p8 }
  0x18   :  { %522 = shalt.err (!%p519_p10)
}
  0x19   :  { %s523_s24 = scalar_lea.vmem %s40_s16, 1024  ;;  %p528_p12 = scmp.lt.s32.totalorder %s40_s16, %s40_s16 }
  0x1a   :  { %p524_p11 = scmp.ne.s32.totalorder %s40_s16, %s523_s24  ;;  %p529_p13 = scmp.lt.s32.totalorder %s523_s24, %s523_s24 }
  0x1c   :  { %p530_p0 = por %p529_p13, %p528_p12 }
  0x1e   :  { %p531_p1 = pnand %p530_p0, %p524_p11 }
  0x20   :  { %534 = shalt.err (!%p531_p1)
}
  0x21   :  { %45 = dma.hbm_to_vmem [thread:$0]  %s655_s5, 1024, %s40_s16, [#allocation5], %s540_s11, %s540_s11, %s541_s12  }
  0x22   :  { %535 = dma.done.wait [#allocation3], 1024  }
  0x23   :  { %536 = vsyncadd [#allocation3], 4294966272 }
  0x24   :  { %537 = dma.done.wait [#allocation5], 1024  }
  0x25   :  { %538 = vsyncadd [#allocation5], 4294966272  ;;  %v543_v0 = vmov 0.0   ;;  %vm544_vm0 = vmmov 0   ;;  %v473_v1 = vld [vmem:[%s651_s1] sm:$0xff]   ;;  %vm77_vm1 = vcmask 130048   ;;  %v360_v43 = vlaneseq }
  0x26   :  { %421 = vmatprep.subr.bf16.mxu0 %v543_v0  ;;  %423 = vmatprep.mubr.msk.bf16.mxu0 %vm544_vm0, %v543_v0  ;;  %v474_v2 = vld [vmem:[%s650_s0] sm:$0xff]   ;;  %v476_v4 = vld [vmem:[#allocation2 + $0x8] sm:$0xff]   ;;  %v477_v5 = vld [vmem:[#allocation2 + $0x10] sm:$0xff]  }
  0x27   :  { %427 = vmatprep.subr.bf16.mxu1 %v543_v0  ;;  %443 = vmatprep.mubr.msk.bf16.mxu1 %vm544_vm0, %v543_v0  ;;  %v475_v3 = vld [vmem:[#allocation2] sm:$0xff]   ;;  %v478_v6 = vld [vmem:[#allocation2 + $0x18] sm:$0xff]   ;;  %v480_v8 = vld [vmem:[#allocation2 + $0x28] sm:$0xff]   ;;  %v361_v44 = vand.u32 127, %v360_v43 }
  0x28   :  { %422 = vmatpush3.bf16.msra.mxu0 %v473_v1  ;;  %428 = vmatpush3.bf16.msra.mxu1 %v475_v3  ;;  %v479_v7 = vld [vmem:[#allocation2 + $0x20] sm:$0xff]   ;;  %v481_v9 = vld [vmem:[#allocation2 + $0x30] sm:$0xff]   ;;  %v482_v10 = vld [vmem:[#allocation2 + $0x38] sm:$0xff]  }
  0x29   :  { %447 = vmatprep.subr.bf16.mxu0 %v543_v0  ;;  %429 = vmatprep.subr.bf16.mxu1 %v543_v0  ;;  %v483_v11 = vld [vmem:[#allocation4] sm:$0xff]   ;;  %v484_v12 = vld [vmem:[#allocation4 + $0x8] sm:$0xff]   ;;  %v485_v13 = vld [vmem:[#allocation4 + $0x10] sm:$0xff]   ;;  %vm362_vm6 = vcmp.ge.s32.totalorder %v361_v44, 4  ;;  %vm363_vm7 = vcmp.lt.s32.totalorder %v361_v44, 8 }
  0x2a   :  { %v486_v14 = vld [vmem:[#allocation4 + $0x18] sm:$0xff]   ;;  %v487_v15 = vld [vmem:[#allocation4 + $0x20] sm:$0xff]   ;;  %v488_v16 = vld [vmem:[#allocation4 + $0x28] sm:$0xff]  }
  0x2b   :  { %424 = vmatmul.mubr.msk.bf16.vlgmr.msra.gmra.mrb[0].mxu0 %vm77_vm1, %v474_v2  ;;  %v379_v17 = vld [vmem:[%s652_s2] ss:$0 sm:$0xff]  ;;  %v489_v29 = vld [vmem:[#allocation4 + $0x30] sm:$0xff]   ;;  %v490_v30 = vld [vmem:[#allocation4 + $0x38] sm:$0xff]  }
  0x2c   :  { %463 = vmatprep.mubr.msk.bf16.mxu0 %vm544_vm0, %v543_v0  ;;  %430 = vmatpush3.bf16.msra.mxu1 %v476_v4  ;;  %v383_v31 = vld [vmem:[%s654_s4] ss:$0 sm:$0xff]  ;;  %vm364_vm8 = vmand %vm362_vm6, %vm363_vm7 }
  0x2d   :  { %431 = vmatprep.subr.bf16.mxu1 %v543_v0  ;;  %448 = vmatpush3.bf16.msra.mxu0 %v483_v11  ;;  %v392_v45 = vld [vmem:[%s656_s6] ss:$0 sm:$0xff] }
  0x2e   :  { %449 = vmatprep.subr.bf16.mxu0 %v543_v0 }
  0x30   :  { %432 = vmatpush3.bf16.msra.mxu1 %v477_v5 }
  0x31   :  { %433 = vmatprep.subr.bf16.mxu1 %v543_v0  ;;  %450 = vmatpush3.bf16.msra.mxu0 %v484_v12 }
  0x32   :  { %451 = vmatprep.subr.bf16.mxu0 %v543_v0 }
  0x34   :  { %434 = vmatpush3.bf16.msra.mxu1 %v478_v6 }
  0x35   :  { %435 = vmatprep.subr.bf16.mxu1 %v543_v0  ;;  %452 = vmatpush3.bf16.msra.mxu0 %v485_v13 }
  0x36   :  { %453 = vmatprep.subr.bf16.mxu0 %v543_v0 }
  0x38   :  { %436 = vmatpush3.bf16.msra.mxu1 %v479_v7 }
  0x39   :  { %437 = vmatprep.subr.bf16.mxu1 %v543_v0  ;;  %454 = vmatpush3.bf16.msra.mxu0 %v486_v14 }
  0x3a   :  { %455 = vmatprep.subr.bf16.mxu0 %v543_v0 }
  0x3c   :  { %438 = vmatpush3.bf16.msra.mxu1 %v480_v8 }
  0x3d   :  { %439 = vmatprep.subr.bf16.mxu1 %v543_v0  ;;  %456 = vmatpush3.bf16.msra.mxu0 %v487_v15 }
  0x3e   :  { %457 = vmatprep.subr.bf16.mxu0 %v543_v0 }
  0x40   :  { %440 = vmatpush3.bf16.msra.mxu1 %v481_v9 }
  0x41   :  { %441 = vmatprep.subr.bf16.mxu1 %v543_v0  ;;  %458 = vmatpush3.bf16.msra.mxu0 %v488_v16 }
  0x42   :  { %459 = vmatprep.subr.bf16.mxu0 %v543_v0 }
  0x44   :  { %442 = vmatpush3.bf16.msra.mxu1 %v482_v10 }
  0x45   :  { %460 = vmatpush3.bf16.msra.mxu0 %v489_v29 }
  0x46   :  { %461 = vmatprep.subr.bf16.mxu0 %v543_v0 }
  0x49   :  { %462 = vmatpush3.bf16.msra.mxu0 %v490_v30 }
  0xfe   :  { %v115_v18 = vpop.f32.mrb[0].mxu0 }
  0xff   :  { %v116_v19 = vadd.f32 %v379_v17, %v115_v18  ;;  %v425_v20 = vpop.f32.mrb[1].mxu0 }
 0x100   :  { %v118_v21 = vpop.f32.mrb[2].mxu0 }
 0x101   :  { %v124_v22 = vmul.f32 0.01, %v116_v19  ;;  %v119_v23 = vadd.f32 %v379_v17, %v118_v21  ;;  %v426_v24 = vpop.f32.mrb[3].mxu0  ;;  %vm122_vm2 = vcmp.ge.f32.partialorder %v116_v19, 0.0 }
 0x103   :  { %vm123_vm3 = vcmp.ge.f32.partialorder %v119_v23, 0.0  ;;  %v125_v25 = vmul.f32 0.01, %v119_v23  ;;  %v126_v26 = vsel %vm122_vm2, %v116_v19, %v124_v22 }
 0x105   :  { %v127_v27 = vsel %vm123_vm3, %v119_v23, %v125_v25 }
 0x106   :  { %v128_v28 = vpack.c.bf16 %v127_v27, %v126_v26 }
 0x108   :  { %444 = vmatmul.mubr.bf16.vlgmr.msra.gmra.mrb[0].mxu1 %v128_v28 }
 0x1db   :  { %v234_v32 = vpop.f32.mrb[0].mxu1 }
 0x1dc   :  { %v235_v33 = vadd.f32 %v383_v31, %v234_v32  ;;  %v445_v34 = vpop.f32.mrb[1].mxu1 }
 0x1dd   :  { %v237_v35 = vpop.f32.mrb[2].mxu1 }
 0x1de   :  { %v243_v36 = vmul.f32 0.01, %v235_v33  ;;  %v238_v37 = vadd.f32 %v383_v31, %v237_v35  ;;  %v446_v38 = vpop.f32.mrb[3].mxu1  ;;  %vm241_vm4 = vcmp.ge.f32.partialorder %v235_v33, 0.0 }
 0x1e0   :  { %vm242_vm5 = vcmp.ge.f32.partialorder %v238_v37, 0.0  ;;  %v244_v39 = vmul.f32 0.01, %v238_v37  ;;  %v245_v40 = vsel %vm241_vm4, %v235_v33, %v243_v36 }
 0x1e2   :  { %v246_v41 = vsel %vm242_vm5, %v238_v37, %v244_v39 }
 0x1e3   :  { %v247_v42 = vpack.c.bf16 %v246_v41, %v245_v40 }
 0x1e5   :  { %464 = vmatmul.mubr.bf16.vlgmr.msra.gmra.mrb[4].mxu0 %v247_v42 }
 0x2b8   :  { %v353_v46 = vpop.f32.mrb[4].mxu0 }
 0x2b9   :  { %v354_v47 = vadd.f32 %v392_v45, %v353_v46  ;;  %v465_v48 = vpop.f32.mrb[5].mxu0 }
 0x2ba   :  { %v356_v49 = vpop.f32.mrb[6].mxu0 }
 0x2bb   :  { %v365_v50 = vmax.f32 %v354_v47, -20.0  ;;  %v357_v51 = vadd.f32 %v392_v45, %v356_v49  ;;  %v466_v52 = vpop.f32.mrb[7].mxu0 }
 0x2bd   :  { %v367_v53 = vmin.f32 %v365_v50, 2.0  ;;  %v366_v54 = vmax.f32 %v357_v51, -20.0 }
 0x2bf   :  { %v369_v55 = vsel %vm364_vm8, %v367_v53, %v354_v47  ;;  %v368_v56 = vmin.f32 %v366_v54, 2.0 }
 0x2c0   :  { %371 = vst [vmem:[%s657_s7] sm:$0xff] %v369_v55 }
 0x2c1   :  { %v370_v57 = vsel %vm364_vm8, %v368_v56, %v357_v51 }
 0x2c2   :  { %372 = vst [vmem:[%s657_s7 + $0x8] sm:$0xff] %v370_v57 }
 0x2c3   :  { %377 = vsyncpa [#allocation3], 1 }
 0x2c4   :  { %378 = vsyncpa [#allocation5], 1 }

</bundles_post_ra>
